<compile_context>
chip_gen: v7x
topology: tpu7x:2x2x1
jax: 0.10.0
libtpu: 0.0.40
codegen_flags: <defaults>
</compile_context>

<pallas_src>
import functools

import jax
import jax.numpy as jnp
from jax.experimental import pallas as pl
from jax.experimental.pallas import tpu as pltpu


def _epilogue(h_f32, b1_ref, w2_ref, b2_ref, o_ref):
    # bias + ReLU in f32.
    h = jnp.maximum(h_f32 + b1_ref[...].astype(jnp.float32), 0.0)
    # Second linear as (1,dim) contracted against (tm,dim) on the feature axis
    # -> result is already (1, tm): lane-dense, unmasked full-lane stores.
    # h is cast down to the weight dtype so the transpose feeding the MXU and
    # the matmul run on the narrow path (f32 accumulate keeps accuracy).
    z = jax.lax.dot_general(
        w2_ref[...], h.astype(w2_ref.dtype),
        dimension_numbers=(((1,), (1,)), ((), ())),
        preferred_element_type=jnp.float32)            # (1, tm)
    z = z + b2_ref[0, 0]
    o_ref[...] = jax.nn.sigmoid(z).astype(o_ref.dtype)


def _kernel_fused(x_ref, w1_ref, b1_ref, w2_ref, b2_ref, o_ref):
    # x_ref:(tm,dim)  w1_ref:(dim,dim)  b1_ref:(1,dim)  w2_ref:(1,dim)
    # b2_ref:(1,1) SMEM  o_ref:(1,tm)
    h = jnp.dot(x_ref[...], w1_ref[...], preferred_element_type=jnp.float32)
    _epilogue(h, b1_ref, w2_ref, b2_ref, o_ref)


def _kernel_ktiled(x_ref, w1_ref, b1_ref, w2_ref, b2_ref, o_ref, acc_ref):
    # Same as above but the contraction dim is tiled over grid axis 1
    # ("arbitrary") with an f32 VMEM accumulator.
    k = pl.program_id(1)

    @pl.when(k == 0)
    def _():
        acc_ref[...] = jnp.zeros_like(acc_ref)

    acc_ref[...] += jnp.dot(x_ref[...], w1_ref[...],
                            preferred_element_type=jnp.float32)

    @pl.when(k == pl.num_programs(1) - 1)
    def _():
        _epilogue(acc_ref[...], b1_ref, w2_ref, b2_ref, o_ref)


def _round_up(x, n):
    return (x + n - 1) // n * n


def _pick_tk(dim, itemsize, resident_budget=16 * 1024 * 1024):
    """Full-dim contraction while W1 comfortably fits VMEM; otherwise K-tile."""
    if dim * dim * itemsize <= resident_budget:
        return dim
    for tk in (1024, 512, 256, 128):
        if dim % tk == 0:
            return tk
    return dim  # odd dim: keep resident (rare)


def _vmem_cap_bytes():
    try:
        return int(pltpu.get_tpu_info().vmem_capacity_bytes * 0.85)
    except Exception:
        return 48 * 1024 * 1024  # conservative: v7x has 64 MiB / TensorCore


@functools.partial(jax.jit, static_argnames=("tm",))
def subject_linear(x, w1_t, b1, w2_row, b2, *, tm=512):
    """x: (..., dim) -> (..., 1), fused Linear/ReLU/Linear/Sigmoid."""
    orig_shape = x.shape
    dim = orig_shape[-1]
    x2d = x.reshape(-1, dim)
    m = x2d.shape[0]

    in_isz = x.dtype.itemsize
    w_isz = w1_t.dtype.itemsize

    tk = _pick_tk(dim, w_isz)
    num_k = dim // tk

    # Adaptive row tile: never pad a tiny batch up to the full 512-row tile.
    tm_eff = min(tm, _round_up(m, 128))

    # Size VMEM from actual usage; shrink tm if the budget doesn't fit.
    cap = _vmem_cap_bytes()

    def budget(tm_):
        w1_buf = 1 if num_k == 1 else 2          # resident vs K-pipelined W1
        b = 2 * tm_ * tk * in_isz                # x tiles (double-buffered)
        b += w1_buf * tk * dim * w_isz           # W1 slab(s)
        b += 2 * dim * w_isz                     # b1 + w2_row (single-buffered)
        b += 2 * tm_ * x.dtype.itemsize          # output strips
        b += tm_ * dim * 4                       # f32 accumulator / h
        b += tm_ * dim * (4 + in_isz)            # epilogue temporaries
        return b

    while budget(tm_eff) > cap and tm_eff > 128:
        tm_eff = max(128, (tm_eff // 2) // 128 * 128)
    vmem_limit = int(min(max(budget(tm_eff) + (2 << 20), 8 << 20), cap))

    m_pad = pl.cdiv(m, tm_eff) * tm_eff
    if m_pad != m:
        x2d = jnp.pad(x2d, ((0, m_pad - m), (0, 0)))
    num_tiles = m_pad // tm_eff

    resident = pl.Buffered(buffer_count=1)   # constant index_map: no 2x buffer

    if num_k == 1:
        kernel = _kernel_fused
        grid = (num_tiles,)
        in_specs = [
            pl.BlockSpec((tm_eff, dim), lambda i: (i, 0)),
            pl.BlockSpec((dim, dim), lambda i: (0, 0), pipeline_mode=resident),
            pl.BlockSpec((1, dim), lambda i: (0, 0), pipeline_mode=resident),
            pl.BlockSpec((1, dim), lambda i: (0, 0), pipeline_mode=resident),
            pl.BlockSpec(memory_space=pltpu.MemorySpace.SMEM),
        ]
        out_specs = pl.BlockSpec((1, tm_eff), lambda i: (i, 0))
        scratch_shapes = []
        dim_sem = ("parallel",)
    else:
        kernel = _kernel_ktiled
        grid = (num_tiles, num_k)
        in_specs = [
            pl.BlockSpec((tm_eff, tk), lambda i, k: (i, k)),
            pl.BlockSpec((tk, dim), lambda i, k: (k, 0)),
            pl.BlockSpec((1, dim), lambda i, k: (0, 0), pipeline_mode=resident),
            pl.BlockSpec((1, dim), lambda i, k: (0, 0), pipeline_mode=resident),
            pl.BlockSpec(memory_space=pltpu.MemorySpace.SMEM),
        ]
        out_specs = pl.BlockSpec((1, tm_eff), lambda i, k: (i, 0))
        scratch_shapes = [pltpu.VMEM((tm_eff, dim), jnp.float32)]
        dim_sem = ("parallel", "arbitrary")

    out = pl.pallas_call(
        kernel,
        out_shape=jax.ShapeDtypeStruct((num_tiles, tm_eff), x.dtype),
        grid_spec=pltpu.PrefetchScalarGridSpec(
            num_scalar_prefetch=0,
            grid=grid,
            in_specs=in_specs,
            out_specs=out_specs,
            scratch_shapes=scratch_shapes,
        ),
        compiler_params=pltpu.CompilerParams(
            dimension_semantics=dim_sem,
            vmem_limit_bytes=vmem_limit,
        ),
    )(x2d, w1_t, b1, w2_row, b2)

    out = out.reshape(m_pad)[:m]
    return out.reshape(orig_shape[:-1] + (1,))


def init_params(key, dim, dtype=jnp.float32):
    """Deterministic init mimicking nn.Linear defaults (uniform +/- 1/sqrt(fan_in))."""
    k1, k2, k3, k4 = jax.random.split(key, 4)
    bound = 1.0 / jnp.sqrt(dim)
    w1_t = jax.random.uniform(k1, (dim, dim), dtype, -bound, bound)   # (in, out)
    b1 = jax.random.uniform(k2, (1, dim), dtype, -bound, bound)
    w2_row = jax.random.uniform(k3, (1, dim), dtype, -bound, bound)   # PyTorch (1, dim)
    b2 = jax.random.uniform(k4, (1, 1), dtype, -bound, bound)
    return w1_t, b1, w2_row, b2


if __name__ == "__main__":
    key = jax.random.PRNGKey(0)
    kx, kp = jax.random.split(key)

    batch, seq, dim = 2, 8, 32
    x = jax.random.normal(kx, (batch, seq, dim), jnp.float32)
    w1_t, b1, w2_row, b2 = init_params(kp, dim)

    # TODO(synk): for dim < 128 the MXU/lanes are only partially occupied;
    # pad dim to 128 outside the kernel if this size ever matters for perf.
    out = subject_linear(x, w1_t, b1, w2_row, b2)
    out = jax.block_until_ready(out)

    # reference check in plain JAX
    ref = jax.nn.sigmoid(jnp.maximum(x @ w1_t + b1, 0.0) @ w2_row.T + b2)
    assert out.shape == (batch, seq, 1), out.shape
    assert jnp.allclose(out, ref, atol=1e-5, rtol=1e-5)

    print("KERNEL_OK")
</pallas_src>

<mosaic_0001>
module attributes {stable_mosaic.version = 11 : i64} {
  func.func @_kernel_fused(%arg0: i32, %arg1: memref<128x32xf32, #tpu.memory_space<vmem>>, %arg2: memref<32x32xf32, #tpu.memory_space<vmem>>, %arg3: memref<1x32xf32, #tpu.memory_space<vmem>>, %arg4: memref<1x32xf32, #tpu.memory_space<vmem>>, %arg5: memref<1x1xf32, #tpu.memory_space<smem>>, %arg6: memref<1x128xf32, #tpu.memory_space<vmem>>) attributes {dimension_semantics = [#tpu.dimension_semantics<parallel>], iteration_bounds = array<i64: 1>, scalar_prefetch = 0 : i64, scratch_operands = 0 : i64, tpu.core_type = #tpu.core_type<tc>, window_params = [{transform_indices = @transform_0, window_bounds = array<i64: 128, 32>}, {pipeline_mode = #tpu.pipeline_mode<synchronous>, transform_indices = @transform_1, window_bounds = array<i64: 32, 32>}, {pipeline_mode = #tpu.pipeline_mode<synchronous>, transform_indices = @transform_2, window_bounds = array<i64: 1, 32>}, {pipeline_mode = #tpu.pipeline_mode<synchronous>, transform_indices = @transform_3, window_bounds = array<i64: 1, 32>}, {transform_indices = @transform_4, window_bounds = array<i64: 1, 1>}, {transform_indices = @transform_5, window_bounds = array<i64: 1, 128>}]} {
    %c0 = arith.constant 0 : index
    %c0_0 = arith.constant 0 : index
    %0 = vector.load %arg1[%c0, %c0_0] : memref<128x32xf32, #tpu.memory_space<vmem>>, vector<128x32xf32>
    %c0_1 = arith.constant 0 : index
    %c0_2 = arith.constant 0 : index
    %1 = vector.load %arg2[%c0_1, %c0_2] : memref<32x32xf32, #tpu.memory_space<vmem>>, vector<32x32xf32>
    %cst = arith.constant dense<0.000000e+00> : vector<128x32xf32>
    %2 = tpu.matmul %0, %1, %cst {dimension_numbers = #tpu.dot_dimension_numbers<[1], [0], [0], [1], [0, 0, 1, 1], [], []>} : vector<128x32xf32>, vector<32x32xf32>, vector<128x32xf32> -> vector<128x32xf32>
    %c0_3 = arith.constant 0 : index
    %c0_4 = arith.constant 0 : index
    %3 = vector.load %arg3[%c0_3, %c0_4] : memref<1x32xf32, #tpu.memory_space<vmem>>, vector<1x32xf32>
    %4 = vector.broadcast %3 : vector<1x32xf32> to vector<128x32xf32>
    %5 = arith.addf %2, %4 : vector<128x32xf32>
    %cst_5 = arith.constant 0.000000e+00 : f32
    %6 = vector.broadcast %cst_5 : f32 to vector<128x32xf32>
    %7 = arith.maximumf %5, %6 : vector<128x32xf32>
    %c0_6 = arith.constant 0 : index
    %c0_7 = arith.constant 0 : index
    %8 = vector.load %arg4[%c0_6, %c0_7] : memref<1x32xf32, #tpu.memory_space<vmem>>, vector<1x32xf32>
    %cst_8 = arith.constant dense<0.000000e+00> : vector<1x128xf32>
    %9 = tpu.matmul %8, %7, %cst_8 {dimension_numbers = #tpu.dot_dimension_numbers<[1], [1], [0], [0], [0, 0, 1, 0], [], []>} : vector<1x32xf32>, vector<128x32xf32>, vector<1x128xf32> -> vector<1x128xf32>
    %c0_9 = arith.constant 0 : index
    %c0_10 = arith.constant 0 : index
    %10 = memref.load %arg5[%c0_9, %c0_10] : memref<1x1xf32, #tpu.memory_space<smem>>
    %11 = vector.broadcast %10 : f32 to vector<1x128xf32>
    %12 = arith.addf %9, %11 : vector<1x128xf32>
    %13 = arith.negf %12 : vector<1x128xf32>
    %14 = math.exp %13 : vector<1x128xf32>
    %cst_11 = arith.constant 1.000000e+00 : f32
    %15 = vector.broadcast %cst_11 : f32 to vector<1x128xf32>
    %16 = arith.addf %15, %14 : vector<1x128xf32>
    %17 = arith.divf %15, %16 : vector<1x128xf32>
    %c0_12 = arith.constant 0 : index
    %c0_13 = arith.constant 0 : index
    %18 = vector.load %arg6[%c0_12, %c0_13] : memref<1x128xf32, #tpu.memory_space<vmem>>, vector<1x128xf32>
    tpu.vector_store %arg6[%c0_12, %c0_13], %17 {strides = array<i32>} : memref<1x128xf32, #tpu.memory_space<vmem>>, vector<1x128xf32>,
    return
  }
  func.func @transform_0(%arg0: i32) -> (i32, i32) {
    %c0_i32 = arith.constant 0 : i32
    %c0_i32_0 = arith.constant 0 : i32
    return %arg0, %c0_i32 : i32, i32
  }
  func.func @transform_1(%arg0: i32) -> (i32, i32) {
    %c0_i32 = arith.constant 0 : i32
    %c0_i32_0 = arith.constant 0 : i32
    %c0_i32_1 = arith.constant 0 : i32
    return %c0_i32, %c0_i32_0 : i32, i32
  }
  func.func @transform_2(%arg0: i32) -> (i32, i32) {
    %c0_i32 = arith.constant 0 : i32
    %c0_i32_0 = arith.constant 0 : i32
    %c0_i32_1 = arith.constant 0 : i32
    return %c0_i32, %c0_i32_0 : i32, i32
  }
  func.func @transform_3(%arg0: i32) -> (i32, i32) {
    %c0_i32 = arith.constant 0 : i32
    %c0_i32_0 = arith.constant 0 : i32
    %c0_i32_1 = arith.constant 0 : i32
    return %c0_i32, %c0_i32_0 : i32, i32
  }
  func.func @transform_4(%arg0: i32) -> (i32, i32) {
    %c0_i32 = arith.constant 0 : i32
    %c0_i32_0 = arith.constant 0 : i32
    %c0_i32_1 = arith.constant 0 : i32
    return %c0_i32, %c0_i32_0 : i32, i32
  }
  func.func @transform_5(%arg0: i32) -> (i32, i32) {
    %c0_i32 = arith.constant 0 : i32
    %c0_i32_0 = arith.constant 0 : i32
    return %arg0, %c0_i32 : i32, i32
  }
}

</mosaic_0001>

<bundles_post_ra>
// kernel: subject_linear.1
= control target key start
LH: loop header
LB: loop body
LE: loop exit
PB: predicated region body
PF: predicated region fallthrough
CT: control target
= control target key end

     0   :  { %vm48_vm0 = vcmask 261120   ;;  %v579_v22 = vmov 0.0|0.0   ;;  %vm580_vm1 = vmmov 0   ;;  %v581_v23 = vmov 0.0   ;;  %s731_s1 = inlined_call_operand.vmem [shape: f32[32,32], index: 1, kind: input, shape index: {}]   ;;  %s732_s0 = inlined_call_operand.vmem [shape: f32[128,32], index: 0, kind: input, shape index: {}]   ;;  %s733_s2 = inlined_call_operand.vmem [shape: f32[1,32], index: 2, kind: input, shape index: {}]   ;;  %s734_s3 = inlined_call_operand.vmem [shape: f32[1,32], index: 3, kind: input, shape index: {}]   ;;  %s735_s4 = inlined_call_operand.<no memory space> [shape: f32[1,1], index: 4, kind: input, shape index: {}]   ;;  %s736_s5 = inlined_call_operand.vmem [shape: f32[1,128], index: 5, kind: output, shape index: {}]  }
   0x1   :  { %v37_v0 = vld [vmem:[%s731_s1] sm:$0xff]  ;;  %v38_v1 = vld [vmem:[%s731_s1 + $0x8] sm:$0xff]  ;;  %v39_v2 = vld [vmem:[%s731_s1 + $0x10] sm:$0xff]  ;;  %540 = vmatprep.subr.bf16.mxu1 %v579_v22  ;;  %529 = vmatprep.mubr.msk.f32.mxu1 %vm580_vm1, %v581_v23 }
   0x2   :  { %v532_v3 = vpack.c.bf16 %v38_v1, %v37_v0  ;;  %v40_v4 = vld [vmem:[%s731_s1 + $0x18] sm:$0xff]  ;;  %v21_v5 = vld [vmem:[%s732_s0] sm:$0xff]  ;;  %v22_v7 = vld [vmem:[%s732_s0 + $0x8] sm:$0xff] }
   0x3   :  { %v536_v6 = vpack.c.bf16 %v40_v4, %v39_v2  ;;  %473 = vmatprep.mubr.msk.f32.mxu0 %vm48_vm0, %v21_v5  ;;  %v23_v8 = vld [vmem:[%s732_s0 + $0x10] sm:$0xff]  ;;  %v24_v9 = vld [vmem:[%s732_s0 + $0x18] sm:$0xff]  ;;  %v25_v10 = vld [vmem:[%s732_s0 + $0x20] sm:$0xff] }
   0x4   :  { %533 = vmatprep.subr.bf16.mxu0 %v532_v3  ;;  %v26_v11 = vld [vmem:[%s732_s0 + $0x28] sm:$0xff]  ;;  %v27_v12 = vld [vmem:[%s732_s0 + $0x30] sm:$0xff]  ;;  %v28_v13 = vld [vmem:[%s732_s0 + $0x38] sm:$0xff] }
   0x5   :  { %535 = vmatpush3.bf16.msra.mxu0 %v532_v3  ;;  %v29_v14 = vld [vmem:[%s732_s0 + $0x40] sm:$0xff]  ;;  %v30_v15 = vld [vmem:[%s732_s0 + $0x48] sm:$0xff]  ;;  %v31_v16 = vld [vmem:[%s732_s0 + $0x50] sm:$0xff] }
   0x6   :  { %537 = vmatprep.subr.bf16.mxu0 %v536_v6  ;;  %v32_v17 = vld [vmem:[%s732_s0 + $0x58] sm:$0xff]  ;;  %v33_v18 = vld [vmem:[%s732_s0 + $0x60] sm:$0xff]  ;;  %v34_v19 = vld [vmem:[%s732_s0 + $0x68] sm:$0xff] }
   0x7   :  { %v35_v20 = vld [vmem:[%s732_s0 + $0x70] sm:$0xff]  ;;  %v36_v21 = vld [vmem:[%s732_s0 + $0x78] sm:$0xff]  ;;  %v393_v24 = vld [vmem:[%s733_s2] ss:$0 sm:$0xff] }
   0x8   :  { %vm694_vm2 = vmpackc.low %vm48_vm0, %vm48_vm0 }
   0x9   :  { %539 = vmatpush3.bf16.msra.mxu0 %v536_v6 }
   0xc   :  { %474 = vmatmul.mubr.msk.f32.vlgmr.msra.gmra.mrb[0].mxu0 %vm48_vm0, %v22_v7 }
   0xd   :  { %476 = vmatprep.mubr.msk.f32.mxu0 %vm48_vm0, %v23_v8 }
  0x10   :  { %477 = vmatmul.mubr.msk.f32.gmra.mrb[2].mxu0 %vm48_vm0, %v24_v9 }
  0x11   :  { %479 = vmatprep.mubr.msk.f32.mxu0 %vm48_vm0, %v25_v10 }
  0x14   :  { %480 = vmatmul.mubr.msk.f32.gmra.mrb[4].mxu0 %vm48_vm0, %v26_v11 }
  0x15   :  { %482 = vmatprep.mubr.msk.f32.mxu0 %vm48_vm0, %v27_v12 }
  0x18   :  { %483 = vmatmul.mubr.msk.f32.gmra.mrb[6].mxu0 %vm48_vm0, %v28_v13 }
  0x19   :  { %485 = vmatprep.mubr.msk.f32.mxu0 %vm48_vm0, %v29_v14 }
  0x1c   :  { %486 = vmatmul.mubr.msk.f32.gmra.mrb[8].mxu0 %vm48_vm0, %v30_v15 }
  0x1d   :  { %488 = vmatprep.mubr.msk.f32.mxu0 %vm48_vm0, %v31_v16 }
  0x20   :  { %489 = vmatmul.mubr.msk.f32.gmra.mrb[10].mxu0 %vm48_vm0, %v32_v17 }
  0x21   :  { %491 = vmatprep.mubr.msk.f32.mxu0 %vm48_vm0, %v33_v18  ;;  %v258_v18 = vld [vmem:[%s734_s3] sm:$0x1] }
  0x24   :  { %492 = vmatmul.mubr.msk.f32.gmra.mrb[12].mxu0 %vm48_vm0, %v34_v19  ;;  %v260_v19 = vstv %s735_s4 }
  0x25   :  { %494 = vmatprep.mubr.msk.f32.mxu0 %vm48_vm0, %v35_v20 }
  0x28   :  { %495 = vmatmul.mubr.msk.f32.gmra.mrb[14].mxu0 %vm48_vm0, %v36_v21 }
  0xdf   :  { %v475_v25 = vpop.f32.mrb[0].mxu0 }
  0xe0   :  { %v169_v26 = vadd.f32 %v475_v25, %v393_v24  ;;  %v163_v27 = vpop.f32.mrb[1].mxu0 }
  0xe1   :  { %v164_v28 = vadd.f32 %v393_v24, %v163_v27 }
  0xe2   :  { %v243_v29 = vmax.f32 %v169_v26, 0.0 }
  0xe3   :  { %v242_v30 = vmax.f32 %v164_v28, 0.0  ;;  %v478_v31 = vpop.f32.mrb[2].mxu0 }
  0xe4   :  { %v179_v32 = vadd.f32 %v478_v31, %v393_v24  ;;  %v173_v33 = vpop.f32.mrb[3].mxu0 }
  0xe5   :  { %v541_v35 = vpack.c.bf16 %v243_v29, %v242_v30  ;;  %v174_v36 = vadd.f32 %v393_v24, %v173_v33 }
  0xe6   :  { %v245_v37 = vmax.f32 %v179_v32, 0.0 }
  0xe7   :  { %v244_v38 = vmax.f32 %v174_v36, 0.0  ;;  %543 = vmatpush3.bf16.xpose.msk.msra.mxu1 %vm694_vm2, %v541_v35  ;;  %v481_v39 = vpop.f32.mrb[4].mxu0 }
  0xe8   :  { %v189_v40 = vadd.f32 %v481_v39, %v393_v24  ;;  %544 = vmatprep.subr.bf16.mxu1 %v579_v22  ;;  %v183_v41 = vpop.f32.mrb[5].mxu0 }
  0xe9   :  { %v545_v42 = vpack.c.bf16 %v245_v37, %v244_v38  ;;  %v184_v43 = vadd.f32 %v393_v24, %v183_v41 }
  0xea   :  { %v247_v44 = vmax.f32 %v189_v40, 0.0 }
  0xeb   :  { %v246_v45 = vmax.f32 %v184_v43, 0.0  ;;  %v484_v46 = vpop.f32.mrb[6].mxu0 }
  0xec   :  { %v199_v47 = vadd.f32 %v484_v46, %v393_v24  ;;  %v193_v48 = vpop.f32.mrb[7].mxu0 }
  0xed   :  { %v549_v49 = vpack.c.bf16 %v247_v44, %v246_v45  ;;  %v194_v50 = vadd.f32 %v393_v24, %v193_v48 }
  0xee   :  { %v249_v51 = vmax.f32 %v199_v47, 0.0 }
  0xef   :  { %547 = vmatpush3.bf16.xpose.msk.msra.mxu1 %vm694_vm2, %v545_v42  ;;  %v248_v52 = vmax.f32 %v194_v50, 0.0  ;;  %v487_v53 = vpop.f32.mrb[8].mxu0 }
  0xf0   :  { %548 = vmatprep.subr.bf16.mxu1 %v579_v22  ;;  %v209_v54 = vadd.f32 %v487_v53, %v393_v24  ;;  %v203_v55 = vpop.f32.mrb[9].mxu0 }
  0xf1   :  { %v553_v56 = vpack.c.bf16 %v249_v51, %v248_v52  ;;  %v204_v57 = vadd.f32 %v393_v24, %v203_v55 }
  0xf2   :  { %v251_v58 = vmax.f32 %v209_v54, 0.0 }
  0xf3   :  { %v250_v59 = vmax.f32 %v204_v57, 0.0  ;;  %v490_v60 = vpop.f32.mrb[10].mxu0 }
  0xf4   :  { %v219_v61 = vadd.f32 %v490_v60, %v393_v24  ;;  %v213_v62 = vpop.f32.mrb[11].mxu0 }
  0xf5   :  { %v557_v63 = vpack.c.bf16 %v251_v58, %v250_v59  ;;  %v214_v0 = vadd.f32 %v393_v24, %v213_v62 }
  0xf6   :  { %v253_v1 = vmax.f32 %v219_v61, 0.0 }
  0xf7   :  { %551 = vmatpush3.bf16.xpose.msk.msra.mxu1 %vm694_vm2, %v549_v49  ;;  %v252_v2 = vmax.f32 %v214_v0, 0.0  ;;  %v493_v3 = vpop.f32.mrb[12].mxu0 }
  0xf8   :  { %552 = vmatprep.subr.bf16.mxu1 %v579_v22  ;;  %v229_v4 = vadd.f32 %v493_v3, %v393_v24  ;;  %v223_v5 = vpop.f32.mrb[13].mxu0 }
  0xf9   :  { %v561_v6 = vpack.c.bf16 %v253_v1, %v252_v2  ;;  %v224_v7 = vadd.f32 %v393_v24, %v223_v5 }
  0xfa   :  { %v255_v8 = vmax.f32 %v229_v4, 0.0 }
  0xfb   :  { %v254_v9 = vmax.f32 %v224_v7, 0.0  ;;  %v496_v10 = vpop.f32.mrb[14].mxu0 }
  0xfc   :  { %v239_v11 = vadd.f32 %v496_v10, %v393_v24  ;;  %v233_v12 = vpop.f32.mrb[15].mxu0 }
  0xfd   :  { %v565_v13 = vpack.c.bf16 %v255_v8, %v254_v9  ;;  %v234_v14 = vadd.f32 %v393_v24, %v233_v12 }
  0xfe   :  { %v257_v15 = vmax.f32 %v239_v11, 0.0 }
  0xff   :  { %555 = vmatpush3.bf16.xpose.msk.msra.mxu1 %vm694_vm2, %v553_v56  ;;  %v256_v16 = vmax.f32 %v234_v14, 0.0 }
 0x100   :  { %556 = vmatprep.subr.bf16.mxu1 %v579_v22 }
 0x101   :  { %v569_v17 = vpack.c.bf16 %v257_v15, %v256_v16 }
 0x107   :  { %559 = vmatpush3.bf16.xpose.msk.msra.mxu1 %vm694_vm2, %v557_v63 }
 0x108   :  { %560 = vmatprep.subr.bf16.mxu1 %v579_v22 }
 0x10f   :  { %563 = vmatpush3.bf16.xpose.msk.msra.mxu1 %vm694_vm2, %v561_v6 }
 0x110   :  { %564 = vmatprep.subr.bf16.mxu1 %v579_v22 }
 0x117   :  { %567 = vmatpush3.bf16.xpose.msk.msra.mxu1 %vm694_vm2, %v565_v13 }
 0x118   :  { %568 = vmatprep.subr.bf16.mxu1 %v579_v22 }
 0x11f   :  { %571 = vmatpush3.bf16.xpose.msk.msra.mxu1 %vm694_vm2, %v569_v17 }
 0x126   :  { %530 = vmatmul.mubr.msk.f32.vlgmr.msra.gmra.mrb[0].mxu1 %vm48_vm0, %v258_v18 }
 0x1f9   :  { %v378_v20 = vpop.f32.mrb[0].mxu1 }
 0x1fa   :  { %v379_v21 = vadd.f32 %v378_v20, %v260_v19  ;;  %v531_v23 = vpop.f32.mrb[1].mxu1 }
 0x1fc   :  { %v427_v24 = vmul.f32 -1.442695, %v379_v21 }
 0x1fe   :  { %575 = vpow2.f32 %v427_v24 }
 0x208   :  { %v576_v25 = vpop.eup %575 }
 0x209   :  { %v385_v22 = vadd.f32 1.0, %v576_v25 }
 0x20b   :  { %577 = vrcp.f32 %v385_v22 }
 0x215   :  { %v578_v26 = vpop.eup %577 }
 0x216   :  { %388 = vst [vmem:[%s736_s5] sm:$0x1] %v578_v26 }

</bundles_post_ra>
